<compile_context>
chip_gen: v6e
topology: v6e:2x2x1
jax: 0.10.0
libtpu: 0.0.40
codegen_flags: <defaults>
</compile_context>

<pallas_src>
import jax
import jax.numpy as jnp
from jax.experimental import pallas as pl
from jax.experimental.pallas import tpu as pltpu

EPS = 1e-12

# Per-array, per-buffer tile budget. 4 MiB tiles -> ~16 MiB pipelined
# (in+out, double buffered), safe on v5e/v6e/v7x while large enough to
# reach ~85% of HBM roofline.
_TILE_BYTES_BUDGET = 4 * 1024 * 1024
_MAX_BLOCK_ROWS = 1024


def _l2norm_kernel(x_ref, o_ref):
    # x_ref: (bm, D) tile resident in VMEM; reduce the full feature dim here.
    x = x_ref[...].astype(jnp.float32)
    ss = jnp.sum(x * x, axis=-1, keepdims=True)            # (bm, 1)
    # rsqrt(max(ss, eps^2)) == 1 / max(sqrt(ss), eps)  (sqrt is monotone),
    # i.e. exactly F.normalize's clamp_min(eps) on the norm. rsqrt -> EUP.
    inv = jax.lax.rsqrt(jnp.maximum(ss, jnp.float32(EPS * EPS)))
    o_ref[...] = (x * inv).astype(o_ref.dtype)


def _sublane_multiple(dtype) -> int:
    # f32 -> 8, bf16/f16 -> 16, int8/fp8 -> 32 (second-to-last tile dim).
    itemsize = jnp.dtype(dtype).itemsize
    return max(8, 32 // max(itemsize, 1))


def _choose_block_rows(batch: int, feat: int, dtype) -> int:
    sub = _sublane_multiple(dtype)
    bytes_per_row = feat * jnp.dtype(dtype).itemsize
    rows = max(sub, _TILE_BYTES_BUDGET // max(bytes_per_row, 1))
    rows = max((rows // sub) * sub, sub)          # round down to sublane pack
    rows = min(rows, _MAX_BLOCK_ROWS)             # keep >=2 steps for megacore
    padded_batch = -(-batch // sub) * sub         # never exceed (padded) batch
    return min(rows, padded_batch)


def _l2_normalize_2d(x: jax.Array) -> jax.Array:
    """L2-normalize each row of a (B, D) array along the last axis."""
    B, D = x.shape
    bm = _choose_block_rows(B, D, x.dtype)
    B_pad = -(-B // bm) * bm
    x_in = jnp.pad(x, ((0, B_pad - B), (0, 0))) if B_pad != B else x

    itemsize = jnp.dtype(x.dtype).itemsize
    tile_bytes = bm * D * itemsize
    # in+out double-buffered tiles + ~3 f32 tile-sized temporaries + margin.
    needed = 4 * tile_bytes + 3 * bm * D * 4 + (1 << 20)
    vmem_limit = int(min(max(needed, 16 * 1024 * 1024), 48 * 1024 * 1024))

    out = pl.pallas_call(
        _l2norm_kernel,
        out_shape=jax.ShapeDtypeStruct((B_pad, D), x.dtype),
        grid_spec=pltpu.PrefetchScalarGridSpec(
            num_scalar_prefetch=0,
            grid=(B_pad // bm,),
            in_specs=[pl.BlockSpec((bm, D), lambda i: (i, 0))],
            out_specs=pl.BlockSpec((bm, D), lambda i: (i, 0)),
        ),
        compiler_params=pltpu.CompilerParams(
            dimension_semantics=("parallel",),
            vmem_limit_bytes=vmem_limit,
        ),
    )(x_in)
    return out[:B] if B_pad != B else out


def l2_normalize(x: jax.Array, dim: int = 1) -> jax.Array:
    """Pallas equivalent of F.normalize(x, p=2, dim=dim, eps=1e-12)."""
    dim = dim % x.ndim
    if x.ndim == 2 and dim == 1:
        return _l2_normalize_2d(x)
    # General rank: move `dim` last, flatten leading dims into rows.
    xm = jnp.moveaxis(x, dim, -1)
    lead_shape, D = xm.shape[:-1], xm.shape[-1]
    rows = 1
    for s in lead_shape:
        rows *= s
    out2d = _l2_normalize_2d(xm.reshape(rows, D))
    return jnp.moveaxis(out2d.reshape(*lead_shape, D), -1, dim)


def _reference(x: jax.Array, dim: int = 1) -> jax.Array:
    xf = x.astype(jnp.float32)
    norm = jnp.sqrt(jnp.sum(xf * xf, axis=dim, keepdims=True))
    return (xf / jnp.maximum(norm, EPS)).astype(x.dtype)


if __name__ == "__main__":
    key = jax.random.PRNGKey(0)
    k1, k2, k3 = jax.random.split(key, 3)

    # 1) SimSiam-style feature matrix, f32: batch=8, hidden=128.
    x32 = jax.random.normal(k1, (8, 128), dtype=jnp.float32)
    out32 = jax.block_until_ready(l2_normalize(x32, dim=1))
    assert jnp.allclose(out32, _reference(x32, 1), atol=1e-6, rtol=1e-6)

    # 2) bf16 with a ragged batch (exercises sublane=16 tiling + padding).
    xb = jax.random.normal(k2, (10, 256), dtype=jnp.bfloat16)
    outb = jax.block_until_ready(l2_normalize(xb, dim=1))
    assert jnp.allclose(outb.astype(jnp.float32),
                        _reference(xb, 1).astype(jnp.float32),
                        atol=1e-2, rtol=1e-2)

    # 3) 4D input, dim=1 (channel dim), like the nn.Module default.
    x4 = jax.random.normal(k3, (2, 4, 16, 16), dtype=jnp.float32)
    out4 = jax.block_until_ready(l2_normalize(x4, dim=1))
    assert jnp.allclose(out4, _reference(x4, 1), atol=1e-6, rtol=1e-6)

    print("KERNEL_OK")
</pallas_src>

<mosaic_0001>
module attributes {stable_mosaic.version = 11 : i64} {
  func.func @_l2norm_kernel(%arg0: i32, %arg1: memref<8x128xf32, #tpu.memory_space<vmem>>, %arg2: memref<8x128xf32, #tpu.memory_space<vmem>>) attributes {dimension_semantics = [#tpu.dimension_semantics<parallel>], iteration_bounds = array<i64: 1>, scalar_prefetch = 0 : i64, scratch_operands = 0 : i64, tpu.core_type = #tpu.core_type<tc>, window_params = [{transform_indices = @transform_0, window_bounds = array<i64: 8, 128>}, {transform_indices = @transform_1, window_bounds = array<i64: 8, 128>}]} {
    %c0 = arith.constant 0 : index
    %c0_0 = arith.constant 0 : index
    %0 = vector.load %arg1[%c0, %c0_0] : memref<8x128xf32, #tpu.memory_space<vmem>>, vector<8x128xf32>
    %1 = arith.mulf %0, %0 : vector<8x128xf32>
    %cst = arith.constant dense<0.000000e+00> : vector<8xf32>
    %2 = vector.multi_reduction <add>, %1, %cst [1] : vector<8x128xf32> to vector<8xf32>
    %3 = vector.shape_cast %2 : vector<8xf32> to vector<8x1xf32>
    %cst_1 = arith.constant 1.000000e-24 : f32
    %4 = vector.broadcast %cst_1 : f32 to vector<8x1xf32>
    %5 = arith.maximumf %3, %4 : vector<8x1xf32>
    %6 = math.rsqrt %5 : vector<8x1xf32>
    %7 = vector.broadcast %6 : vector<8x1xf32> to vector<8x128xf32>
    %8 = arith.mulf %0, %7 : vector<8x128xf32>
    %c0_2 = arith.constant 0 : index
    %c0_3 = arith.constant 0 : index
    %9 = vector.load %arg2[%c0_2, %c0_3] : memref<8x128xf32, #tpu.memory_space<vmem>>, vector<8x128xf32>
    tpu.vector_store %arg2[%c0_2, %c0_3], %8 {strides = array<i32>} : memref<8x128xf32, #tpu.memory_space<vmem>>, vector<8x128xf32>,
    return
  }
  func.func @transform_0(%arg0: i32) -> (i32, i32) {
    %c0_i32 = arith.constant 0 : i32
    %c0_i32_0 = arith.constant 0 : i32
    return %arg0, %c0_i32 : i32, i32
  }
  func.func @transform_1(%arg0: i32) -> (i32, i32) {
    %c0_i32 = arith.constant 0 : i32
    %c0_i32_0 = arith.constant 0 : i32
    return %arg0, %c0_i32 : i32, i32
  }
}

</mosaic_0001>

<bundles_post_ra>
// kernel: tpu_custom_call.1
= control target key start
LH: loop header
LB: loop body
LE: loop exit
PB: predicated region body
PF: predicated region fallthrough
CT: control target
= control target key end

     0   :  { %6 = vsyncpa [#allocation3], 0  ;;  %s110_s0 = inlined_call_operand.hbm [shape: f32[8,128], index: 0, kind: input, shape index: {}]   ;;  %s111_s1 = inlined_call_operand.hbm [shape: f32[8,128], index: 1, kind: output, shape index: {}]  }
   0x1   :  { %7 = vsyncpa [#allocation4], 0  ;;  %s92_s6 = smov [#allocation2]  }
   0x2   :  { %s14_s7 = sshll.u32 %s92_s6, 4  ;;  %s15_s7 = int_to_ptr.vmem [resolvable:$true] %s14_s7 }
   0x3   :  { %s56_s8 = scalar_lea.vmem %s15_s7, 128  ;;  %p61_p1 = scmp.lt.s32.totalorder %s15_s7, %s15_s7 }
   0x4   :  { %p57_p0 = scmp.ne.s32.totalorder %s15_s7, %s56_s8  ;;  %p62_p2 = scmp.lt.s32.totalorder %s56_s8, %s56_s8 }
   0x6   :  { %p63_p3 = por %p62_p2, %p61_p1 }
   0x8   :  { %p64_p4 = pnand %p63_p3, %p57_p0 }
   0xa   :  { %67 = shalt.err (!%p64_p4)
}
   0xb   :  { %17 = dma.hbm_to_vmem [thread:$0]  %s110_s0, 128, %s15_s7, [#allocation3]  }
   0xc   :  { %88 = dma.done.wait [#allocation3], 128  }
   0xd   :  { %89 = vsyncadd [#allocation3], 4294967168  ;;  %v21_v0 = vld [vmem:[#allocation2] sm:$0xff]  ;;  %s93_s11 = smov [#allocation5]  }
   0xe   :  { %v22_v1 = vmul.f32 %v21_v0, %v21_v0  ;;  %s35_s12 = sshll.u32 %s93_s11, 4  ;;  %s36_s12 = int_to_ptr.vmem [resolvable:$true] %s35_s12 }
   0xf   :  { %s68_s13 = scalar_lea.vmem %s36_s12, 128  ;;  %p73_p6 = scmp.lt.s32.totalorder %s36_s12, %s36_s12 }
  0x10   :  { %23 = vadd.xlane.f32.xlu0 %v22_v1  ;;  %p69_p5 = scmp.ne.s32.totalorder %s36_s12, %s68_s13  ;;  %p74_p7 = scmp.lt.s32.totalorder %s68_s13, %s68_s13 }
  0x12   :  { %p75_p8 = por %p74_p7, %p73_p6 }
  0x14   :  { %p76_p9 = pnand %p75_p8, %p69_p5 }
  0x99   :  { %v24_v2 = vpop.xlane.xlu0 %23 }
  0x9a   :  { %v25_v3 = vmax.f32 %v24_v2, 1e-24 }
  0x9c   :  { %46 = vrsqrt.f32 %v25_v3 }
  0xa9   :  { %v47_v4 = vpop.eup %46 }
  0xaa   :  { %v27_v5 = vmul.f32 %v47_v4, %v21_v0 }
  0xac   :  { %28 = vst [vmem:[#allocation5] sm:$0xff] %v27_v5 }
  0xad   :  { %79 = shalt.err (!%p76_p9)
}
  0xae   :  { %38 = dma.vmem_to_hbm [thread:$0]  %s36_s12, 128, %s111_s1, [#allocation4]  }
  0xaf   :  { %90 = dma.done.wait [#allocation4], 128  }
  0xb0   :  { %91 = vsyncadd [#allocation4], 4294967168 }
  0xb1   :  { %42 = vsyncpa [#allocation3], 1 }
  0xb2   :  { %43 = vsyncpa [#allocation4], 1 }

</bundles_post_ra>
